<compile_context>
chip_gen: v7x
topology: tpu7x:2x2x1
jax: 0.10.0
libtpu: 0.0.40
codegen_flags: <defaults>
</compile_context>

<pallas_src>
import functools

import jax
import jax.numpy as jnp
from jax.experimental import pallas as pl
from jax.experimental.pallas import tpu as pltpu

LN_EPS = 1e-5
_INV_SQRT2 = 0.7071067811865476

_LANE = 128   # vreg lane width
_BQ = 16      # batch-tile quantum (bf16 sublane packing: 16 rows / vreg)


def _round_up(n, m):
    return ((n + m - 1) // m) * m


def _default_vmem_limit_bytes():
    """Generation-aware VMEM limit: 0.8 * physical capacity, conservative fallback."""
    try:
        cap = getattr(pltpu.get_tpu_info(), "vmem_capacity_bytes", None)
    except Exception:
        cap = None
    if not cap:
        cap = 64 * 1024 * 1024  # conservative (fits v7x's 64 MiB/TC)
    return int(cap * 0.8)


def _ln_gelu_out(h, lnp_ref, w2_ref, b2_ref, o_ref, inv_hid):
    """LayerNorm (true width) -> exact GELU -> Linear2 epilogue on one batch tile."""
    b1 = lnp_ref[0:1, :]
    gamma = lnp_ref[1:2, :]
    beta = lnp_ref[2:3, :]

    h = h + b1  # padded hidden cols stay exactly 0 (zero W1 cols + zero b1)

    # One-pass LN statistics over the TRUE hidden width: padded cols are exactly 0,
    # so sums over the padded width equal sums over the true width; divide-by-count
    # is a precomputed 1/hid multiply.
    s1 = jnp.sum(h, axis=-1, keepdims=True)
    s2 = jnp.sum(h * h, axis=-1, keepdims=True)
    mean = s1 * inv_hid
    var = jnp.maximum(s2 * inv_hid - mean * mean, 0.0)  # biased variance (torch default)
    hn = (h - mean) * jax.lax.rsqrt(var + LN_EPS)
    hn = hn * gamma + beta  # gamma/beta zero-padded -> padded cols stay 0

    # GELU (exact, erf-based — torch nn.GELU default).
    ge = 0.5 * hn * (1.0 + jax.lax.erf(hn * _INV_SQRT2))

    # Dropout: identity in eval mode.

    # Linear 2 — bf16 operands, f32 accumulation on the MXU.
    out = jnp.dot(ge.astype(jnp.bfloat16), w2_ref[...],
                  preferred_element_type=jnp.float32)
    o_ref[...] = (out + b2_ref[...]).astype(o_ref.dtype)


def head_kernel(x_ref, w1_ref, lnp_ref, w2_ref, b2_ref, o_ref, *scratch,
                inv_hid, nk):
    """One (batch-tile, K-tile) grid step.

    x_ref   : (tile_b, tk_in)  bf16
    w1_ref  : (tk_in,  hid_p)  bf16
    lnp_ref : (3, hid_p)       f32   rows = [b1, gamma, beta] (zero-padded past true hid)
    w2_ref  : (hid_p, out_p)   bf16
    b2_ref  : (1, out_p)       f32
    o_ref   : (tile_b, out_p)  f32
    scratch : () when nk == 1, else (acc_ref (tile_b, hid_p) f32,)
    """
    if nk == 1:
        # Whole reduction in one step: no accumulator round-trip through VMEM.
        h = jnp.dot(x_ref[...], w1_ref[...], preferred_element_type=jnp.float32)
        _ln_gelu_out(h, lnp_ref, w2_ref, b2_ref, o_ref, inv_hid)
    else:
        acc_ref, = scratch
        k = pl.program_id(1)

        @pl.when(k == 0)
        def _():
            acc_ref[...] = jnp.zeros_like(acc_ref)

        acc_ref[...] += jnp.dot(x_ref[...], w1_ref[...],
                                preferred_element_type=jnp.float32)

        @pl.when(k == nk - 1)
        def _():
            _ln_gelu_out(acc_ref[...], lnp_ref, w2_ref, b2_ref, o_ref, inv_hid)


def prepare_params(params, *, vmem_limit_bytes=None):
    """One-time pad + bf16 cast of the head weights, plus the tiling plan.

    Do this ONCE; pass the result to task_specific_head for every call.
    """
    in_size, hid = params["w1"].shape
    out_size = params["w2"].shape[1]
    if vmem_limit_bytes is None:
        vmem_limit_bytes = _default_vmem_limit_bytes()

    in_p = _round_up(in_size, _LANE)
    hid_p = _round_up(hid, _LANE)
    out_p = _round_up(out_size, _LANE)

    # K-tiling plan: keep resident bf16 weights under ~1/3 of the VMEM limit; the rest is
    # headroom for activation blocks, the accumulator and Mosaic internal scratch.
    budget = vmem_limit_bytes // 3
    resident = hid_p * out_p * 2 + 4 * hid_p * 4 + out_p * 4   # W2 + lnp + b2
    w1_bytes = in_p * hid_p * 2
    if w1_bytes + resident <= budget:
        tk_in = in_p
    else:
        avail = max(budget - resident, 2 * _LANE * hid_p * 2)
        tk_in = max(_LANE, (avail // (4 * hid_p)) // _LANE * _LANE)  # 2 bufs * 2 B/elem
        tk_in = min(tk_in, in_p)
        in_p = _round_up(in_p, tk_in)
    nk = in_p // tk_in

    # Pad with exact zeros (LN-padding invariant), then cast weights to bf16.
    w1 = jnp.pad(params["w1"], ((0, in_p - in_size), (0, hid_p - hid))).astype(jnp.bfloat16)
    w2 = jnp.pad(params["w2"], ((0, hid_p - hid), (0, out_p - out_size))).astype(jnp.bfloat16)
    b2 = jnp.pad(params["b2"], ((0, 0), (0, out_p - out_size))).astype(jnp.float32)
    lnp = jnp.pad(
        jnp.concatenate([params["b1"], params["gamma"], params["beta"]], axis=0),
        ((0, 0), (0, hid_p - hid)),
    ).astype(jnp.float32)

    return {
        "w1": w1, "lnp": lnp, "w2": w2, "b2": b2,
        "meta": dict(in_size=in_size, hid=hid, out_size=out_size,
                     in_p=in_p, hid_p=hid_p, out_p=out_p,
                     tk_in=tk_in, nk=nk, vmem_limit_bytes=vmem_limit_bytes),
    }


def task_specific_head(x, prepared, *, tile_b=None):
    """x: (B, input_size) f32. prepared: output of prepare_params. Returns (B, out) f32."""
    meta = prepared["meta"]
    B, in_size = x.shape
    assert in_size == meta["in_size"], "x feature size does not match prepared weights"
    in_p, hid_p, out_p = meta["in_p"], meta["hid_p"], meta["out_p"]
    tk_in, nk = meta["tk_in"], meta["nk"]
    out_dtype = x.dtype

    # Batch tiling: quantum 16 (bf16 packing); >= 2 tiles once B > 16 (v7x megacore);
    # cap 512 so v5e/v6e single-TC gets big MXU passes with few grid steps.
    if tile_b is None:
        if B <= _BQ:
            tile_b = _BQ
        else:
            tile_b = min(512, _round_up(-(-B // 2), _BQ))
    tile_b = max(_BQ, _round_up(tile_b, _BQ))
    B_p = _round_up(B, tile_b)
    nb = B_p // tile_b

    # Per-call activation prep: pad + bf16 cast fused (weights already prepared).
    xp = jnp.pad(x, ((0, B_p - B), (0, in_p - in_size))).astype(jnp.bfloat16)

    kernel = functools.partial(head_kernel, inv_hid=1.0 / float(meta["hid"]), nk=nk)

    # Grid-invariant parameter blocks -> single buffer (fetched once, reused).
    invariant = {"pipeline_mode": pl.Buffered(1)}
    w1_kwargs = invariant if nk == 1 else {}

    cost = pl.CostEstimate(
        flops=int(2.0 * B_p * hid_p * (in_p + out_p)),
        transcendentals=int(B_p * hid_p),
        bytes_accessed=int(xp.size * 2 + prepared["w1"].size * 2 + prepared["w2"].size * 2
                           + prepared["lnp"].size * 4 + prepared["b2"].size * 4
                           + B_p * out_p * 4),
    )

    out_padded = pl.pallas_call(
        kernel,
        out_shape=jax.ShapeDtypeStruct((B_p, out_p), out_dtype),
        grid_spec=pltpu.PrefetchScalarGridSpec(
            num_scalar_prefetch=0,
            grid=(nb, nk),
            in_specs=[
                pl.BlockSpec((tile_b, tk_in), lambda i, k: (i, k)),                 # x tile
                pl.BlockSpec((tk_in, hid_p), lambda i, k: (k, 0), **w1_kwargs),     # W1
                pl.BlockSpec((3, hid_p), lambda i, k: (0, 0), **invariant),         # [b1;gamma;beta]
                pl.BlockSpec((hid_p, out_p), lambda i, k: (0, 0), **invariant),     # W2
                pl.BlockSpec((1, out_p), lambda i, k: (0, 0), **invariant),         # b2
            ],
            out_specs=pl.BlockSpec((tile_b, out_p), lambda i, k: (i, 0)),
            scratch_shapes=([pltpu.VMEM((tile_b, hid_p), jnp.float32)] if nk > 1 else []),
        ),
        compiler_params=pltpu.CompilerParams(
            dimension_semantics=("parallel", "arbitrary"),
            vmem_limit_bytes=meta["vmem_limit_bytes"],
        ),
        cost_estimate=cost,
    )(xp, prepared["w1"], prepared["lnp"], prepared["w2"], prepared["b2"])

    return out_padded[:B, :meta["out_size"]]


def init_params(key, input_size, output_size, hidden_size=None):
    if hidden_size is None:
        hidden_size = max(output_size * 2, input_size // 2)
    k1, k2, k3, k4 = jax.random.split(key, 4)
    bound1 = 1.0 / (input_size ** 0.5)
    bound2 = 1.0 / (hidden_size ** 0.5)
    return {
        "w1": jax.random.uniform(k1, (input_size, hidden_size), jnp.float32, -bound1, bound1),
        "b1": jax.random.uniform(k2, (1, hidden_size), jnp.float32, -bound1, bound1),
        "gamma": jnp.ones((1, hidden_size), jnp.float32),
        "beta": jnp.zeros((1, hidden_size), jnp.float32),
        "w2": jax.random.uniform(k3, (hidden_size, output_size), jnp.float32, -bound2, bound2),
        "b2": jax.random.uniform(k4, (1, output_size), jnp.float32, -bound2, bound2),
    }


def _reference(x, p):
    # Pure f32 reference of the torch forward (eval mode).
    h = x @ p["w1"] + p["b1"]
    mean = jnp.mean(h, axis=-1, keepdims=True)
    var = jnp.mean((h - mean) ** 2, axis=-1, keepdims=True)
    hn = (h - mean) / jnp.sqrt(var + LN_EPS) * p["gamma"] + p["beta"]
    ge = 0.5 * hn * (1.0 + jax.lax.erf(hn * _INV_SQRT2))
    return ge @ p["w2"] + p["b2"]


if __name__ == "__main__":
    key = jax.random.PRNGKey(0)
    kx, kp = jax.random.split(key)

    batch, input_size, output_size = 8, 32, 8   # hidden_size -> max(16, 16) = 16
    x = jax.random.normal(kx, (batch, input_size), jnp.float32)
    params = init_params(kp, input_size, output_size)

    prepared = prepare_params(params)           # one-time weight pad + bf16 cast
    out = task_specific_head(x, prepared)
    out = jax.block_until_ready(out)

    ref = _reference(x, params)
    assert out.shape == (batch, output_size)
    # bf16 MXU operands -> ~1e-2-level relative error vs the f32 reference.
    assert jnp.allclose(out, ref, atol=3e-2, rtol=3e-2), (
        f"mismatch vs reference, max abs diff = {float(jnp.max(jnp.abs(out - ref)))}"
    )
    print("KERNEL_OK")
</pallas_src>

<mosaic_0001>
module attributes {stable_mosaic.version = 11 : i64} {
  func.func @head_kernel(%arg0: i32, %arg1: i32, %arg2: memref<16x128xbf16, #tpu.memory_space<vmem>>, %arg3: memref<128x128xbf16, #tpu.memory_space<vmem>>, %arg4: memref<3x128xf32, #tpu.memory_space<vmem>>, %arg5: memref<128x128xbf16, #tpu.memory_space<vmem>>, %arg6: memref<1x128xf32, #tpu.memory_space<vmem>>, %arg7: memref<16x128xf32, #tpu.memory_space<vmem>>) attributes {dimension_semantics = [#tpu.dimension_semantics<parallel>, #tpu.dimension_semantics<arbitrary>], iteration_bounds = array<i64: 1, 1>, scalar_prefetch = 0 : i64, scratch_operands = 0 : i64, tpu.core_type = #tpu.core_type<tc>, window_params = [{transform_indices = @transform_0, window_bounds = array<i64: 16, 128>}, {pipeline_mode = #tpu.pipeline_mode<synchronous>, transform_indices = @transform_1, window_bounds = array<i64: 128, 128>}, {pipeline_mode = #tpu.pipeline_mode<synchronous>, transform_indices = @transform_2, window_bounds = array<i64: 3, 128>}, {pipeline_mode = #tpu.pipeline_mode<synchronous>, transform_indices = @transform_3, window_bounds = array<i64: 128, 128>}, {pipeline_mode = #tpu.pipeline_mode<synchronous>, transform_indices = @transform_4, window_bounds = array<i64: 1, 128>}, {transform_indices = @transform_5, window_bounds = array<i64: 16, 128>}]} {
    %c0 = arith.constant 0 : index
    %c0_0 = arith.constant 0 : index
    %0 = vector.load %arg2[%c0, %c0_0] : memref<16x128xbf16, #tpu.memory_space<vmem>>, vector<16x128xbf16>
    %c0_1 = arith.constant 0 : index
    %c0_2 = arith.constant 0 : index
    %1 = vector.load %arg3[%c0_1, %c0_2] : memref<128x128xbf16, #tpu.memory_space<vmem>>, vector<128x128xbf16>
    %cst = arith.constant dense<0.000000e+00> : vector<16x128xf32>
    %2 = tpu.matmul %0, %1, %cst {dimension_numbers = #tpu.dot_dimension_numbers<[1], [0], [0], [1], [0, 0, 1, 1], [], []>} : vector<16x128xbf16>, vector<128x128xbf16>, vector<16x128xf32> -> vector<16x128xf32>
    %c0_3 = arith.constant 0 : index
    %c0_4 = arith.constant 0 : index
    %3 = vector.load %arg4[%c0_3, %c0_4] : memref<3x128xf32, #tpu.memory_space<vmem>>, vector<1x128xf32>
    %c1 = arith.constant 1 : index
    %c0_5 = arith.constant 0 : index
    %4 = vector.load %arg4[%c1, %c0_5] : memref<3x128xf32, #tpu.memory_space<vmem>>, vector<1x128xf32>
    %c2 = arith.constant 2 : index
    %c0_6 = arith.constant 0 : index
    %5 = vector.load %arg4[%c2, %c0_6] : memref<3x128xf32, #tpu.memory_space<vmem>>, vector<1x128xf32>
    %6 = vector.broadcast %3 : vector<1x128xf32> to vector<16x128xf32>
    %7 = arith.addf %2, %6 : vector<16x128xf32>
    %cst_7 = arith.constant dense<0.000000e+00> : vector<16xf32>
    %8 = vector.multi_reduction <add>, %7, %cst_7 [1] : vector<16x128xf32> to vector<16xf32>
    %9 = vector.shape_cast %8 : vector<16xf32> to vector<16x1xf32>
    %10 = arith.mulf %7, %7 : vector<16x128xf32>
    %cst_8 = arith.constant dense<0.000000e+00> : vector<16xf32>
    %11 = vector.multi_reduction <add>, %10, %cst_8 [1] : vector<16x128xf32> to vector<16xf32>
    %12 = vector.shape_cast %11 : vector<16xf32> to vector<16x1xf32>
    %cst_9 = arith.constant 6.250000e-02 : f32
    %13 = vector.broadcast %cst_9 : f32 to vector<16x1xf32>
    %14 = arith.mulf %9, %13 : vector<16x1xf32>
    %cst_10 = arith.constant 6.250000e-02 : f32
    %15 = vector.broadcast %cst_10 : f32 to vector<16x1xf32>
    %16 = arith.mulf %12, %15 : vector<16x1xf32>
    %17 = arith.mulf %14, %14 : vector<16x1xf32>
    %18 = arith.subf %16, %17 : vector<16x1xf32>
    %cst_11 = arith.constant 0.000000e+00 : f32
    %19 = vector.broadcast %cst_11 : f32 to vector<16x1xf32>
    %20 = arith.maximumf %18, %19 : vector<16x1xf32>
    %21 = vector.broadcast %14 : vector<16x1xf32> to vector<16x128xf32>
    %22 = arith.subf %7, %21 : vector<16x128xf32>
    %cst_12 = arith.constant 9.99999974E-6 : f32
    %23 = vector.broadcast %cst_12 : f32 to vector<16x1xf32>
    %24 = arith.addf %20, %23 : vector<16x1xf32>
    %25 = math.rsqrt %24 : vector<16x1xf32>
    %26 = vector.broadcast %25 : vector<16x1xf32> to vector<16x128xf32>
    %27 = arith.mulf %22, %26 : vector<16x128xf32>
    %28 = vector.broadcast %4 : vector<1x128xf32> to vector<16x128xf32>
    %29 = arith.mulf %27, %28 : vector<16x128xf32>
    %30 = vector.broadcast %5 : vector<1x128xf32> to vector<16x128xf32>
    %31 = arith.addf %29, %30 : vector<16x128xf32>
    %cst_13 = arith.constant 5.000000e-01 : f32
    %32 = vector.broadcast %cst_13 : f32 to vector<16x128xf32>
    %33 = arith.mulf %32, %31 : vector<16x128xf32>
    %cst_14 = arith.constant 0.707106769 : f32
    %34 = vector.broadcast %cst_14 : f32 to vector<16x128xf32>
    %35 = arith.mulf %31, %34 : vector<16x128xf32>
    %36 = math.erf %35 : vector<16x128xf32>
    %cst_15 = arith.constant 1.000000e+00 : f32
    %37 = vector.broadcast %cst_15 : f32 to vector<16x128xf32>
    %38 = arith.addf %37, %36 : vector<16x128xf32>
    %39 = arith.mulf %33, %38 : vector<16x128xf32>
    %40 = arith.truncf %39 : vector<16x128xf32> to vector<16x128xbf16>
    %c0_16 = arith.constant 0 : index
    %c0_17 = arith.constant 0 : index
    %41 = vector.load %arg5[%c0_16, %c0_17] : memref<128x128xbf16, #tpu.memory_space<vmem>>, vector<128x128xbf16>
    %cst_18 = arith.constant dense<0.000000e+00> : vector<16x128xf32>
    %42 = tpu.matmul %40, %41, %cst_18 {dimension_numbers = #tpu.dot_dimension_numbers<[1], [0], [0], [1], [0, 0, 1, 1], [], []>} : vector<16x128xbf16>, vector<128x128xbf16>, vector<16x128xf32> -> vector<16x128xf32>
    %c0_19 = arith.constant 0 : index
    %c0_20 = arith.constant 0 : index
    %43 = vector.load %arg6[%c0_19, %c0_20] : memref<1x128xf32, #tpu.memory_space<vmem>>, vector<1x128xf32>
    %44 = vector.broadcast %43 : vector<1x128xf32> to vector<16x128xf32>
    %45 = arith.addf %42, %44 : vector<16x128xf32>
    %c0_21 = arith.constant 0 : index
    %c0_22 = arith.constant 0 : index
    %46 = vector.load %arg7[%c0_21, %c0_22] : memref<16x128xf32, #tpu.memory_space<vmem>>, vector<16x128xf32>
    tpu.vector_store %arg7[%c0_21, %c0_22], %45 {strides = array<i32>} : memref<16x128xf32, #tpu.memory_space<vmem>>, vector<16x128xf32>,
    return
  }
  func.func @transform_0(%arg0: i32, %arg1: i32) -> (i32, i32) {
    %c0_i32 = arith.constant 0 : i32
    return %arg0, %arg1 : i32, i32
  }
  func.func @transform_1(%arg0: i32, %arg1: i32) -> (i32, i32) {
    %c0_i32 = arith.constant 0 : i32
    %c0_i32_0 = arith.constant 0 : i32
    return %arg1, %c0_i32 : i32, i32
  }
  func.func @transform_2(%arg0: i32, %arg1: i32) -> (i32, i32) {
    %c0_i32 = arith.constant 0 : i32
    %c0_i32_0 = arith.constant 0 : i32
    %c0_i32_1 = arith.constant 0 : i32
    return %c0_i32, %c0_i32_0 : i32, i32
  }
  func.func @transform_3(%arg0: i32, %arg1: i32) -> (i32, i32) {
    %c0_i32 = arith.constant 0 : i32
    %c0_i32_0 = arith.constant 0 : i32
    %c0_i32_1 = arith.constant 0 : i32
    return %c0_i32, %c0_i32_0 : i32, i32
  }
  func.func @transform_4(%arg0: i32, %arg1: i32) -> (i32, i32) {
    %c0_i32 = arith.constant 0 : i32
    %c0_i32_0 = arith.constant 0 : i32
    %c0_i32_1 = arith.constant 0 : i32
    return %c0_i32, %c0_i32_0 : i32, i32
  }
  func.func @transform_5(%arg0: i32, %arg1: i32) -> (i32, i32) {
    %c0_i32 = arith.constant 0 : i32
    %c0_i32_0 = arith.constant 0 : i32
    return %arg0, %c0_i32 : i32, i32
  }
}

</mosaic_0001>

<bundles_post_ra>
// kernel: tpu_custom_call.1
= control target key start
LH: loop header
LB: loop body
LE: loop exit
PB: predicated region body
PF: predicated region fallthrough
CT: control target
= control target key end

     0   :  { %10 = vsyncpa [#allocation3], 0  ;;  %s708_s0 = inlined_call_operand.hbm [shape: bf16[16,128], index: 0, kind: input, shape index: {}]   ;;  %s709_s1 = inlined_call_operand.hbm [shape: bf16[128,128], index: 1, kind: input, shape index: {}]   ;;  %s710_s2 = inlined_call_operand.vmem [shape: f32[3,128], index: 2, kind: input, shape index: {}]   ;;  %s711_s3 = inlined_call_operand.hbm [shape: bf16[128,128], index: 3, kind: input, shape index: {}]   ;;  %s712_s4 = inlined_call_operand.vmem [shape: f32[1,128], index: 4, kind: input, shape index: {}]   ;;  %s713_s5 = inlined_call_operand.hbm [shape: f32[16,128], index: 5, kind: output, shape index: {}]  }
   0x1   :  { %11 = vsyncpa [#allocation6], 0 }
   0x2   :  { %12 = vsyncpa [#allocation4], 0  ;;  %s574_s18 = smov [#allocation5]   ;;  %s575_s20 = smov [#allocation2]  }
   0x3   :  { %s30_s19 = sshll.u32 %s574_s18, 4  ;;  %s18_s21 = sshll.u32 %s575_s20, 4  ;;  %s31_s19 = int_to_ptr.vmem [resolvable:$true] %s30_s19  ;;  %s614_s21 = int_to_ptr.vmem [resolvable:$true] %s18_s21 }
   0x4   :  { %s480_s24 = scalar_lea.hbm %s709_s1, 1024 }
   0x5   :  { %p481_p0 = scmp.ne.s32.totalorder %s709_s1, %s480_s24  ;;  %p484_p1 = scmp.lt.u32.totalorder %s480_s24, %s709_s1 }
   0x7   :  { %p486_p2 = pnand %p484_p1, %p481_p0 }
   0x9   :  { %489 = shalt.err (!%p486_p2)
}
   0xa   :  { %s490_s29 = scalar_lea.vmem %s31_s19, 1024  ;;  %p495_p4 = scmp.lt.s32.totalorder %s31_s19, %s31_s19 }
   0xb   :  { %p491_p3 = scmp.ne.s32.totalorder %s31_s19, %s490_s29  ;;  %p496_p5 = scmp.lt.s32.totalorder %s490_s29, %s490_s29 }
   0xd   :  { %p497_p6 = por %p496_p5, %p495_p4 }
   0xf   :  { %p498_p7 = pnand %p497_p6, %p491_p3 }
  0x11   :  { %501 = shalt.err (!%p498_p7)
}
  0x12   :  { %s576_s30 = smov 64   ;;  %s577_s6 = smov 4  }
  0x13   :  { %36 = dma.hbm_to_vmem [thread:$0]  %s709_s1, 1024, %s31_s19, [#allocation6], %s576_s30, %s576_s30, %s577_s6  }
  0x14   :  { %s502_s11 = scalar_lea.hbm %s708_s0, 128 }
  0x15   :  { %p503_p8 = scmp.ne.s32.totalorder %s708_s0, %s502_s11  ;;  %p506_p9 = scmp.lt.u32.totalorder %s502_s11, %s708_s0 }
  0x17   :  { %p508_p10 = pnand %p506_p9, %p503_p8 }
  0x19   :  { %511 = shalt.err (!%p508_p10)
}
  0x1a   :  { %s512_s16 = scalar_lea.vmem %s614_s21, 128  ;;  %p517_p12 = scmp.lt.s32.totalorder %s614_s21, %s614_s21 }
  0x1b   :  { %p513_p11 = scmp.ne.s32.totalorder %s614_s21, %s512_s16  ;;  %p518_p13 = scmp.lt.s32.totalorder %s512_s16, %s512_s16 }
  0x1d   :  { %p519_p0 = por %p518_p13, %p517_p12 }
  0x1f   :  { %p520_p1 = pnand %p519_p0, %p513_p11 }
  0x21   :  { %523 = shalt.err (!%p520_p1)
}
  0x22   :  { %24 = dma.hbm_to_vmem [thread:$0]  %s708_s0, 128, %s614_s21, [#allocation3], %s576_s30, %s576_s30, %s577_s6  }
  0x23   :  { %s578_s18 = smov [#allocation7]   ;;  %s524_s23 = scalar_lea.hbm %s711_s3, 1024 }
  0x24   :  { %s44_s19 = sshll.u32 %s578_s18, 4  ;;  %p525_p2 = scmp.ne.s32.totalorder %s711_s3, %s524_s23  ;;  %s45_s19 = int_to_ptr.vmem [resolvable:$true] %s44_s19 }
  0x25   :  { %p528_p3 = scmp.lt.u32.totalorder %s524_s23, %s711_s3 }
  0x27   :  { %p530_p4 = pnand %p528_p3, %p525_p2 }
  0x29   :  { %533 = shalt.err (!%p530_p4)
}
  0x2a   :  { %s534_s28 = scalar_lea.vmem %s45_s19, 1024  ;;  %p539_p6 = scmp.lt.s32.totalorder %s45_s19, %s45_s19 }
  0x2b   :  { %p535_p5 = scmp.ne.s32.totalorder %s45_s19, %s534_s28  ;;  %p540_p7 = scmp.lt.s32.totalorder %s534_s28, %s534_s28 }
  0x2d   :  { %p541_p8 = por %p540_p7, %p539_p6 }
  0x2f   :  { %p542_p9 = pnand %p541_p8, %p535_p5 }
  0x31   :  { %545 = shalt.err (!%p542_p9)
}
  0x32   :  { %50 = dma.hbm_to_vmem [thread:$0]  %s711_s3, 1024, %s45_s19, [#allocation6], %s576_s30, %s576_s30, %s577_s6  }
  0x33   :  { %568 = dma.done.wait [#allocation3], 128  }
  0x34   :  { %569 = vsyncadd [#allocation3], 4294967168 }
  0x35   :  { %570 = dma.done.wait [#allocation6], 2048  }
  0x36   :  { %571 = vsyncadd [#allocation6], 4294965248  ;;  %v579_v0 = vmov 0.0   ;;  %vm580_vm0 = vmmov 0   ;;  %v455_v1 = vld [vmem:[#allocation5] sm:$0xff]   ;;  %v456_v2 = vld [vmem:[#allocation5 + $0x8] sm:$0xff]  }
  0x37   :  { %405 = vmatprep.subr.bf16.mxu0 %v579_v0  ;;  %421 = vmatprep.mubr.msk.bf16.mxu0 %vm580_vm0, %v579_v0  ;;  %v457_v3 = vld [vmem:[#allocation5 + $0x10] sm:$0xff]   ;;  %v458_v4 = vld [vmem:[#allocation5 + $0x18] sm:$0xff]   ;;  %v459_v5 = vld [vmem:[#allocation5 + $0x20] sm:$0xff]   ;;  %s581_s10 = smov [#allocation8]  }
  0x38   :  { %425 = vmatprep.subr.bf16.mxu1 %v579_v0  ;;  %441 = vmatprep.mubr.msk.bf16.mxu1 %vm580_vm0, %v579_v0  ;;  %v460_v6 = vld [vmem:[#allocation5 + $0x28] sm:$0xff]   ;;  %v461_v7 = vld [vmem:[#allocation5 + $0x30] sm:$0xff]   ;;  %v462_v8 = vld [vmem:[#allocation5 + $0x38] sm:$0xff]   ;;  %s353_s11 = sshll.u32 %s581_s10, 4  ;;  %s354_s11 = int_to_ptr.vmem [resolvable:$true] %s353_s11 }
  0x39   :  { %406 = vmatpush3.bf16.msra.mxu0 %v455_v1  ;;  %v463_v9 = vld [vmem:[#allocation2] sm:$0xff]   ;;  %v464_v19 = vld [vmem:[#allocation7] sm:$0xff]   ;;  %v465_v20 = vld [vmem:[#allocation7 + $0x8] sm:$0xff]   ;;  %s546_s12 = scalar_lea.vmem %s354_s11, 256  ;;  %p551_p11 = scmp.lt.s32.totalorder %s354_s11, %s354_s11 }
  0x3a   :  { %407 = vmatprep.subr.bf16.mxu0 %v579_v0  ;;  %v366_v10 = vld [vmem:[%s710_s2] ss:$0 sm:$0xff]  ;;  %426 = vmatpush3.bf16.msra.mxu1 %v464_v19  ;;  %v466_v21 = vld [vmem:[#allocation7 + $0x10] sm:$0xff]   ;;  %v468_v23 = vld [vmem:[#allocation7 + $0x20] sm:$0xff]   ;;  %p547_p10 = scmp.ne.s32.totalorder %s354_s11, %s546_s12  ;;  %p552_p12 = scmp.lt.s32.totalorder %s546_s12, %s546_s12 }
  0x3b   :  { %427 = vmatprep.subr.bf16.mxu1 %v579_v0  ;;  %v467_v22 = vld [vmem:[#allocation7 + $0x18] sm:$0xff]   ;;  %v469_v24 = vld [vmem:[#allocation7 + $0x28] sm:$0xff]   ;;  %v470_v25 = vld [vmem:[#allocation7 + $0x30] sm:$0xff]  }
  0x3c   :  { %v471_v26 = vld [vmem:[#allocation7 + $0x38] sm:$0xff]   ;;  %p553_p13 = por %p552_p12, %p551_p11 }
  0x3d   :  { %408 = vmatpush3.bf16.msra.mxu0 %v456_v2  ;;  %v376_v45 = vld [vmem:[%s710_s2 + $0x1] ss:$0 sm:$0xff]  ;;  %v377_v47 = vld [vmem:[%s710_s2 + $0x2] ss:$0 sm:$0xff]  ;;  %v378_v2 = vld [vmem:[%s712_s4] ss:$0 sm:$0xff] }
  0x3e   :  { %409 = vmatprep.subr.bf16.mxu0 %v579_v0  ;;  %428 = vmatpush3.bf16.msra.mxu1 %v465_v20  ;;  %p554_p0 = pnand %p553_p13, %p547_p10 }
  0x3f   :  { %429 = vmatprep.subr.bf16.mxu1 %v579_v0 }
  0x41   :  { %410 = vmatpush3.bf16.msra.mxu0 %v457_v3 }
  0x42   :  { %411 = vmatprep.subr.bf16.mxu0 %v579_v0  ;;  %430 = vmatpush3.bf16.msra.mxu1 %v466_v21 }
  0x43   :  { %431 = vmatprep.subr.bf16.mxu1 %v579_v0 }
  0x45   :  { %412 = vmatpush3.bf16.msra.mxu0 %v458_v4 }
  0x46   :  { %413 = vmatprep.subr.bf16.mxu0 %v579_v0  ;;  %432 = vmatpush3.bf16.msra.mxu1 %v467_v22 }
  0x47   :  { %433 = vmatprep.subr.bf16.mxu1 %v579_v0 }
  0x49   :  { %414 = vmatpush3.bf16.msra.mxu0 %v459_v5 }
  0x4a   :  { %415 = vmatprep.subr.bf16.mxu0 %v579_v0  ;;  %434 = vmatpush3.bf16.msra.mxu1 %v468_v23 }
  0x4b   :  { %435 = vmatprep.subr.bf16.mxu1 %v579_v0 }
  0x4d   :  { %416 = vmatpush3.bf16.msra.mxu0 %v460_v6 }
  0x4e   :  { %417 = vmatprep.subr.bf16.mxu0 %v579_v0  ;;  %436 = vmatpush3.bf16.msra.mxu1 %v469_v24 }
  0x4f   :  { %437 = vmatprep.subr.bf16.mxu1 %v579_v0 }
  0x51   :  { %418 = vmatpush3.bf16.msra.mxu0 %v461_v7 }
  0x52   :  { %419 = vmatprep.subr.bf16.mxu0 %v579_v0  ;;  %438 = vmatpush3.bf16.msra.mxu1 %v470_v25 }
  0x53   :  { %439 = vmatprep.subr.bf16.mxu1 %v579_v0 }
  0x55   :  { %420 = vmatpush3.bf16.msra.mxu0 %v462_v8 }
  0x56   :  { %440 = vmatpush3.bf16.msra.mxu1 %v471_v26 }
  0x58   :  { %422 = vmatmul.mubr.bf16.vlgmr.msra.gmra.mrb[0].mxu0 %v463_v9 }
 0x12b   :  { %v176_v11 = vpop.f32.mrb[0].mxu0 }
 0x12c   :  { %v177_v12 = vadd.f32 %v366_v10, %v176_v11  ;;  %v423_v13 = vpop.f32.mrb[1].mxu0 }
 0x12d   :  { %v179_v14 = vpop.f32.mrb[2].mxu0 }
 0x12e   :  { %v180_v15 = vadd.f32 %v366_v10, %v179_v14  ;;  %183 = vadd.xlane.f32.xlu0 %v177_v12  ;;  %v424_v16 = vpop.f32.mrb[3].mxu0  ;;  %v187_v17 = vmul.f32 %v177_v12, %v177_v12 }
 0x130   :  { %189 = vadd.xlane.f32.xlu1 %v187_v17  ;;  %v188_v18 = vmul.f32 %v180_v15, %v180_v15 }
 0x132   :  { %185 = vadd.xlane.f32.xlu0 %v180_v15 }
 0x134   :  { %191 = vadd.xlane.f32.xlu1 %v188_v18 }
 0x1bb   :  { %v184_v27 = vpop.xlane.xlu0 %183 }
 0x1bc   :  { %v193_v28 = vmul.f32 0.0625, %v184_v27 }
 0x1bd   :  { %v190_v29 = vpop.xlane.xlu1 %189 }
 0x1be   :  { %v197_v30 = vmul.f32 %v193_v28, %v193_v28  ;;  %v195_v31 = vmul.f32 0.0625, %v190_v29  ;;  %v203_v43 = vsub.f32 %v177_v12, %v193_v28 }
 0x1bf   :  { %v186_v32 = vpop.xlane.xlu0 %185 }
 0x1c0   :  { %v199_v33 = vsub.f32 %v195_v31, %v197_v30  ;;  %v194_v34 = vmul.f32 0.0625, %v186_v32 }
 0x1c1   :  { %v192_v35 = vpop.xlane.xlu1 %191 }
 0x1c2   :  { %v201_v36 = vmax.f32 %v199_v33, 0.0  ;;  %v198_v37 = vmul.f32 %v194_v34, %v194_v34  ;;  %v196_v38 = vmul.f32 0.0625, %v192_v35  ;;  %v204_v48 = vsub.f32 %v180_v15, %v194_v34 }
 0x1c4   :  { %v205_v39 = vadd.f32 1e-05, %v201_v36  ;;  %v200_v40 = vsub.f32 %v196_v38, %v198_v37 }
 0x1c6   :  { %472 = vrsqrt.f32 %v205_v39  ;;  %v202_v41 = vmax.f32 %v200_v40, 0.0 }
 0x1c8   :  { %v206_v42 = vadd.f32 1e-05, %v202_v41 }
 0x1ca   :  { %474 = vrsqrt.f32 %v206_v42 }
 0x1d0   :  { %v473_v44 = vpop.eup %472 }
 0x1d1   :  { %v209_v46 = vmul.f32 %v473_v44, %v203_v43 }
 0x1d3   :  { %v215_v49 = vmul.f32 %v376_v45, %v209_v46 }
 0x1d4   :  { %v475_v50 = vpop.eup %474 }
 0x1d5   :  { %v210_v51 = vmul.f32 %v475_v50, %v204_v48  ;;  %v221_v52 = vadd.f32 %v377_v47, %v215_v49 }
 0x1d7   :  { %v216_v53 = vmul.f32 %v376_v45, %v210_v51  ;;  %v225_v54 = vmul.f32 0.70710677, %v221_v52  ;;  %v223_v60 = vmul.f32 0.5, %v221_v52 }
 0x1d9   :  { %v222_v55 = vadd.f32 %v377_v47, %v216_v53  ;;  %476 = verf.f32 %v225_v54 }
 0x1db   :  { %v226_v56 = vmul.f32 0.70710677, %v222_v55  ;;  %v224_v61 = vmul.f32 0.5, %v222_v55 }
 0x1dd   :  { %478 = verf.f32 %v226_v56 }
 0x1e3   :  { %v477_v57 = vpop.eup %476 }
 0x1e4   :  { %v229_v58 = vadd.f32 1.0, %v477_v57 }
 0x1e6   :  { %v231_v63 = vmul.f32 %v229_v58, %v223_v60 }
 0x1e7   :  { %v479_v59 = vpop.eup %478 }
 0x1e8   :  { %v230_v62 = vadd.f32 1.0, %v479_v59 }
 0x1ea   :  { %v232_v0 = vmul.f32 %v230_v62, %v224_v61 }
 0x1ec   :  { %v233_v1 = vpack.c.bf16 %v232_v0, %v231_v63 }
 0x1ee   :  { %442 = vmatmul.mubr.bf16.vlgmr.msra.gmra.mrb[0].mxu1 %v233_v1 }
 0x2c1   :  { %v339_v3 = vpop.f32.mrb[0].mxu1 }
 0x2c2   :  { %v340_v4 = vadd.f32 %v378_v2, %v339_v3  ;;  %v443_v5 = vpop.f32.mrb[1].mxu1 }
 0x2c3   :  { %v342_v6 = vpop.f32.mrb[2].mxu1 }
 0x2c4   :  { %346 = vst [vmem:[#allocation8] sm:$0xff] %v340_v4  ;;  %v343_v7 = vadd.f32 %v378_v2, %v342_v6  ;;  %v444_v8 = vpop.f32.mrb[3].mxu1 }
 0x2c6   :  { %347 = vst [vmem:[#allocation8 + $0x8] sm:$0xff] %v343_v7 }
 0x2c7   :  { %557 = shalt.err (!%p554_p0)
}
 0x2c8   :  { %s558_s14 = scalar_lea.hbm %s713_s5, 256 }
 0x2c9   :  { %p559_p1 = scmp.ne.s32.totalorder %s713_s5, %s558_s14  ;;  %p562_p2 = scmp.lt.u32.totalorder %s558_s14, %s713_s5 }
 0x2cb   :  { %p564_p3 = pnand %p562_p2, %p559_p1 }
 0x2cd   :  { %567 = shalt.err (!%p564_p3)
}
 0x2ce   :  { %s582_s18 = smov 128   ;;  %s583_s19 = smov 8  }
 0x2cf   :  { %359 = dma.vmem_to_hbm [thread:$0]  %s354_s11, 256, %s713_s5, [#allocation4], %s582_s18, %s582_s18, %s583_s19  }
 0x2d0   :  { %572 = dma.done.wait [#allocation4], 256  }
 0x2d1   :  { %573 = vsyncadd [#allocation4], 4294967040 }
 0x2d2   :  { %363 = vsyncpa [#allocation3], 1 }
 0x2d3   :  { %364 = vsyncpa [#allocation6], 1 }
 0x2d4   :  { %365 = vsyncpa [#allocation4], 1 }

</bundles_post_ra>
